<compile_context>
chip_gen: v7x
topology: tpu7x:2x2x1
jax: 0.10.0
libtpu: 0.0.40
codegen_flags: <defaults>
</compile_context>

<pallas_src>
import functools

import jax
import jax.numpy as jnp
from jax.experimental import pallas as pl
from jax.experimental.pallas import tpu as pltpu

_LANE = 128          # lane width (last-dim alignment)
_ROW_ALIGN = 16      # sublane packing for the batch-tile dim (bf16-friendly)
_MAX_TILE = 1024     # upper bound on the batch tile


def _round_up(x, m):
    return ((x + m - 1) // m) * m


def _round_down(x, m):
    return (x // m) * m


def _vmem_capacity_bytes():
    """Physical VMEM per TensorCore; conservative (v7x) fallback if the query fails."""
    try:
        return int(pltpu.get_tpu_info().vmem_capacity_bytes)
    except Exception:
        return 64 << 20


def _resident_spec(shape):
    """BlockSpec for operands whose block never changes across the grid.

    Single-buffered (pl.Buffered(1)): constant index_map means no re-fetch ever
    happens, so the second buffer the default pipelining would allocate is pure
    VMEM waste.  Falls back to a plain spec if pipeline_mode is unsupported."""
    if hasattr(pl, "Buffered"):
        try:
            return pl.BlockSpec(shape, lambda i: (0, 0), pipeline_mode=pl.Buffered(1))
        except Exception:
            pass
    return pl.BlockSpec(shape, lambda i: (0, 0))


def autoencoder_kernel(x_ref, w1_ref, b1_ref, w2_ref, b2_ref, o_ref):
    # bf16 cast happens in VMEM (x may arrive straight from HBM as f32).
    x = x_ref[...].astype(jnp.bfloat16)
    # encoder: h = relu(x @ W1 + b1)   (bf16 MXU operands, f32 accumulation)
    h = jnp.dot(x, w1_ref[...], preferred_element_type=jnp.float32)
    h = jnp.maximum(h + b1_ref[...], 0.0)
    # decoder: y = sigmoid(h @ W2 + b2)
    y = jnp.dot(h.astype(w2_ref.dtype), w2_ref[...],
                preferred_element_type=jnp.float32)
    y = y + b2_ref[...]
    # sigmoid = 1 / (1 + exp(-y)): exp and approx-reciprocal both use the EUP
    # slot, keeping the epilogue off the VALU.
    o_ref[...] = pl.reciprocal(1.0 + jnp.exp(-y), approx=True).astype(o_ref.dtype)


def _pick_batch_tile(batch, i_pad, h_pad, x_bytes, out_bytes):
    """Largest batch tile (multiple of 16, <= _MAX_TILE) that fits the VMEM budget,
    capped so the grid has >= 2 steps whenever the batch allows it."""
    vmem = _vmem_capacity_bytes()
    budget = int(vmem * 0.70)  # ~45 MiB on v7x (64 MiB), ~90 MiB on v5e/v6e (128 MiB)
    # Resident operands are SINGLE-buffered (see _resident_spec): bf16 W1 + W2, f32 biases.
    resident = 2 * i_pad * h_pad * 2 + (i_pad + h_pad) * 4
    # Per batch row: double-buffered x + out tiles plus in-kernel intermediates
    # (bf16 x cast, f32 + bf16 hidden, f32 pre-sigmoid).
    per_row = (2 * i_pad * x_bytes          # x tile, Buffered(2)
               + 2 * i_pad * out_bytes      # out tile, Buffered(2)
               + i_pad * 2                  # bf16 cast of x
               + h_pad * (4 + 2)            # f32 hidden + bf16 hidden
               + i_pad * 4)                 # f32 pre-sigmoid
    avail = max(budget - resident, _ROW_ALIGN * per_row)
    tb = max(_ROW_ALIGN, _round_down(min(_MAX_TILE, avail // per_row), _ROW_ALIGN))
    # >= 2 grid steps when possible: both v7x TensorCores get work ("parallel"
    # axis) and the x/out DMAs actually overlap with compute.
    half = _round_down(_round_up(batch, _ROW_ALIGN) // 2, _ROW_ALIGN)
    if half >= _ROW_ALIGN:
        tb = min(tb, half)
    return int(min(tb, _round_up(batch, _ROW_ALIGN)))


def prepare_params(w1, b1, w2, b2):
    """Pad + cast weights ONCE (lane-dense 128-padded, bf16 weights / f32 biases)
    so per-call forwards don't re-read f32 weights from HBM just to pad them.
    w1: (input_dim, hidden), w2: (hidden, input_dim)  [== PyTorch weight^T]."""
    input_dim, hidden_dim = w1.shape
    i_pad = _round_up(input_dim, _LANE)
    h_pad = _round_up(hidden_dim, _LANE)
    w1_p = jnp.zeros((i_pad, h_pad), jnp.bfloat16).at[:input_dim, :hidden_dim].set(
        w1.astype(jnp.bfloat16))
    w2_p = jnp.zeros((h_pad, i_pad), jnp.bfloat16).at[:hidden_dim, :input_dim].set(
        w2.astype(jnp.bfloat16))
    b1_p = jnp.zeros((1, h_pad), jnp.float32).at[:, :hidden_dim].set(
        jnp.reshape(b1, (1, hidden_dim)).astype(jnp.float32))
    b2_p = jnp.zeros((1, i_pad), jnp.float32).at[:, :input_dim].set(
        jnp.reshape(b2, (1, input_dim)).astype(jnp.float32))
    return w1_p, b1_p, w2_p, b2_p


@functools.partial(jax.jit, static_argnames=("batch_tile",))
def autoencoder_forward(x, w1_p, b1_p, w2_p, b2_p, *, batch_tile=None):
    """x: (B, input_dim); padded params from prepare_params.
    Returns sigmoid(relu(x @ W1 + b1) @ W2 + b2), shape (B, input_dim), dtype x.dtype."""
    B, input_dim = x.shape
    i_pad, h_pad = w1_p.shape
    assert w2_p.shape == (h_pad, i_pad) and input_dim <= i_pad
    out_dtype = x.dtype

    tb = batch_tile or _pick_batch_tile(
        B, i_pad, h_pad, x.dtype.itemsize, jnp.dtype(out_dtype).itemsize)
    b_pad = _round_up(B, tb)

    if (b_pad, i_pad) != (B, input_dim):
        # Padding needed anyway -> pad straight into bf16 (halves the extra traffic).
        x_in = jnp.zeros((b_pad, i_pad), jnp.bfloat16).at[:B, :input_dim].set(
            x.astype(jnp.bfloat16))
    else:
        # Already lane-dense and tile-aligned: stream x in as-is, cast in VMEM.
        x_in = x

    grid = (b_pad // tb,)
    vmem = _vmem_capacity_bytes()
    vmem_limit = int(min(vmem * 0.85, vmem - (4 << 20)))

    cost = pl.CostEstimate(
        flops=4 * b_pad * i_pad * h_pad,                       # two matmuls
        transcendentals=2 * b_pad * i_pad,                     # exp + approx recip
        bytes_accessed=(x_in.size * x_in.dtype.itemsize
                        + w1_p.size * 2 + w2_p.size * 2
                        + (b1_p.size + b2_p.size) * 4
                        + b_pad * i_pad * jnp.dtype(out_dtype).itemsize),
    )

    out_pad = pl.pallas_call(
        autoencoder_kernel,
        out_shape=jax.ShapeDtypeStruct((b_pad, i_pad), out_dtype),
        grid_spec=pl.GridSpec(
            grid=grid,
            in_specs=[
                pl.BlockSpec((tb, i_pad), lambda i: (i, 0)),   # x tile (streamed)
                _resident_spec((i_pad, h_pad)),                # W1 (resident, 1 buffer)
                _resident_spec((1, h_pad)),                    # b1
                _resident_spec((h_pad, i_pad)),                # W2 (resident, 1 buffer)
                _resident_spec((1, i_pad)),                    # b2
            ],
            out_specs=pl.BlockSpec((tb, i_pad), lambda i: (i, 0)),
        ),
        compiler_params=pltpu.CompilerParams(
            dimension_semantics=("parallel",),
            vmem_limit_bytes=vmem_limit,
        ),
        cost_estimate=cost,
    )(x_in, w1_p, b1_p, w2_p, b2_p)

    return out_pad[:B, :input_dim]


def compute_reconstruction_loss(x, w1_p, b1_p, w2_p, b2_p):
    """Per-row MSE between reconstruction and input (matches the PyTorch helper;
    eval()/no_grad are no-ops under JAX)."""
    recon = autoencoder_forward(x, w1_p, b1_p, w2_p, b2_p)
    return jnp.mean((recon - x.astype(recon.dtype)) ** 2, axis=1)


def init_params(key, input_dim, hidden_dim, dtype=jnp.float32):
    """Matches nn.Linear's uniform(-1/sqrt(fan_in), 1/sqrt(fan_in)) init.
    Weights stored as (in_features, out_features) == W^T of PyTorch's (out, in)."""
    k1, k2, k3, k4 = jax.random.split(key, 4)
    bound1 = 1.0 / jnp.sqrt(input_dim)
    bound2 = 1.0 / jnp.sqrt(hidden_dim)
    w1 = jax.random.uniform(k1, (input_dim, hidden_dim), dtype, -bound1, bound1)
    b1 = jax.random.uniform(k2, (1, hidden_dim), dtype, -bound1, bound1)
    w2 = jax.random.uniform(k3, (hidden_dim, input_dim), dtype, -bound2, bound2)
    b2 = jax.random.uniform(k4, (1, input_dim), dtype, -bound2, bound2)
    return w1, b1, w2, b2


if __name__ == "__main__":
    key = jax.random.PRNGKey(0)
    k_x, k_p = jax.random.split(key)

    batch, input_dim, hidden_dim = 8, 32, 16
    x = jax.random.normal(k_x, (batch, input_dim), dtype=jnp.float32)
    w1, b1, w2, b2 = init_params(k_p, input_dim, hidden_dim)

    padded = prepare_params(w1, b1, w2, b2)          # one-time pad/cast of weights
    out = autoencoder_forward(x, *padded)
    out = jax.block_until_ready(out)

    # Pure-JAX f32 reference (kernel uses bf16 matmul operands + approx reciprocal).
    h_ref = jnp.maximum(x @ w1 + b1, 0.0)
    y_ref = jax.nn.sigmoid(h_ref @ w2 + b2)
    assert out.shape == (batch, input_dim)
    assert jnp.allclose(out, y_ref, atol=2e-2, rtol=2e-2), (
        float(jnp.max(jnp.abs(out - y_ref))))

    losses = jax.block_until_ready(compute_reconstruction_loss(x, *padded))
    assert losses.shape == (batch,)

    print("KERNEL_OK")
</pallas_src>

<mosaic_0001>
module attributes {stable_mosaic.version = 11 : i64} {
  func.func @autoencoder_kernel(%arg0: i32, %arg1: memref<16x128xbf16, #tpu.memory_space<vmem>>, %arg2: memref<128x128xbf16, #tpu.memory_space<vmem>>, %arg3: memref<1x128xf32, #tpu.memory_space<vmem>>, %arg4: memref<128x128xbf16, #tpu.memory_space<vmem>>, %arg5: memref<1x128xf32, #tpu.memory_space<vmem>>, %arg6: memref<16x128xf32, #tpu.memory_space<vmem>>) attributes {dimension_semantics = [#tpu.dimension_semantics<parallel>], iteration_bounds = array<i64: 1>, scalar_prefetch = 0 : i64, scratch_operands = 0 : i64, tpu.core_type = #tpu.core_type<tc>, window_params = [{transform_indices = @transform_0, window_bounds = array<i64: 16, 128>}, {pipeline_mode = #tpu.pipeline_mode<synchronous>, transform_indices = @transform_1, window_bounds = array<i64: 128, 128>}, {pipeline_mode = #tpu.pipeline_mode<synchronous>, transform_indices = @transform_2, window_bounds = array<i64: 1, 128>}, {pipeline_mode = #tpu.pipeline_mode<synchronous>, transform_indices = @transform_3, window_bounds = array<i64: 128, 128>}, {pipeline_mode = #tpu.pipeline_mode<synchronous>, transform_indices = @transform_4, window_bounds = array<i64: 1, 128>}, {transform_indices = @transform_5, window_bounds = array<i64: 16, 128>}]} {
    %c0 = arith.constant 0 : index
    %c0_0 = arith.constant 0 : index
    %0 = vector.load %arg1[%c0, %c0_0] : memref<16x128xbf16, #tpu.memory_space<vmem>>, vector<16x128xbf16>
    %c0_1 = arith.constant 0 : index
    %c0_2 = arith.constant 0 : index
    %1 = vector.load %arg2[%c0_1, %c0_2] : memref<128x128xbf16, #tpu.memory_space<vmem>>, vector<128x128xbf16>
    %cst = arith.constant dense<0.000000e+00> : vector<16x128xf32>
    %2 = tpu.matmul %0, %1, %cst {dimension_numbers = #tpu.dot_dimension_numbers<[1], [0], [0], [1], [0, 0, 1, 1], [], []>} : vector<16x128xbf16>, vector<128x128xbf16>, vector<16x128xf32> -> vector<16x128xf32>
    %c0_3 = arith.constant 0 : index
    %c0_4 = arith.constant 0 : index
    %3 = vector.load %arg3[%c0_3, %c0_4] : memref<1x128xf32, #tpu.memory_space<vmem>>, vector<1x128xf32>
    %4 = vector.broadcast %3 : vector<1x128xf32> to vector<16x128xf32>
    %5 = arith.addf %2, %4 : vector<16x128xf32>
    %cst_5 = arith.constant 0.000000e+00 : f32
    %6 = vector.broadcast %cst_5 : f32 to vector<16x128xf32>
    %7 = arith.maximumf %5, %6 : vector<16x128xf32>
    %8 = arith.truncf %7 : vector<16x128xf32> to vector<16x128xbf16>
    %c0_6 = arith.constant 0 : index
    %c0_7 = arith.constant 0 : index
    %9 = vector.load %arg4[%c0_6, %c0_7] : memref<128x128xbf16, #tpu.memory_space<vmem>>, vector<128x128xbf16>
    %cst_8 = arith.constant dense<0.000000e+00> : vector<16x128xf32>
    %10 = tpu.matmul %8, %9, %cst_8 {dimension_numbers = #tpu.dot_dimension_numbers<[1], [0], [0], [1], [0, 0, 1, 1], [], []>} : vector<16x128xbf16>, vector<128x128xbf16>, vector<16x128xf32> -> vector<16x128xf32>
    %c0_9 = arith.constant 0 : index
    %c0_10 = arith.constant 0 : index
    %11 = vector.load %arg5[%c0_9, %c0_10] : memref<1x128xf32, #tpu.memory_space<vmem>>, vector<1x128xf32>
    %12 = vector.broadcast %11 : vector<1x128xf32> to vector<16x128xf32>
    %13 = arith.addf %10, %12 : vector<16x128xf32>
    %cst_11 = arith.constant 0.000000e+00 : f32
    %14 = vector.broadcast %cst_11 : f32 to vector<16x128xf32>
    %15 = arith.subf %14, %13 : vector<16x128xf32>
    %16 = math.exp %15 : vector<16x128xf32>
    %cst_12 = arith.constant 1.000000e+00 : f32
    %17 = vector.broadcast %cst_12 : f32 to vector<16x128xf32>
    %18 = arith.addf %17, %16 : vector<16x128xf32>
    %19 = tpu.reciprocal %18 {approx = true} : vector<16x128xf32> -> vector<16x128xf32>
    %c0_13 = arith.constant 0 : index
    %c0_14 = arith.constant 0 : index
    %20 = vector.load %arg6[%c0_13, %c0_14] : memref<16x128xf32, #tpu.memory_space<vmem>>, vector<16x128xf32>
    tpu.vector_store %arg6[%c0_13, %c0_14], %19 {strides = array<i32>} : memref<16x128xf32, #tpu.memory_space<vmem>>, vector<16x128xf32>,
    return
  }
  func.func @transform_0(%arg0: i32) -> (i32, i32) {
    %c0_i32 = arith.constant 0 : i32
    %c0_i32_0 = arith.constant 0 : i32
    return %arg0, %c0_i32 : i32, i32
  }
  func.func @transform_1(%arg0: i32) -> (i32, i32) {
    %c0_i32 = arith.constant 0 : i32
    %c0_i32_0 = arith.constant 0 : i32
    %c0_i32_1 = arith.constant 0 : i32
    return %c0_i32, %c0_i32_0 : i32, i32
  }
  func.func @transform_2(%arg0: i32) -> (i32, i32) {
    %c0_i32 = arith.constant 0 : i32
    %c0_i32_0 = arith.constant 0 : i32
    %c0_i32_1 = arith.constant 0 : i32
    return %c0_i32, %c0_i32_0 : i32, i32
  }
  func.func @transform_3(%arg0: i32) -> (i32, i32) {
    %c0_i32 = arith.constant 0 : i32
    %c0_i32_0 = arith.constant 0 : i32
    %c0_i32_1 = arith.constant 0 : i32
    return %c0_i32, %c0_i32_0 : i32, i32
  }
  func.func @transform_4(%arg0: i32) -> (i32, i32) {
    %c0_i32 = arith.constant 0 : i32
    %c0_i32_0 = arith.constant 0 : i32
    %c0_i32_1 = arith.constant 0 : i32
    return %c0_i32, %c0_i32_0 : i32, i32
  }
  func.func @transform_5(%arg0: i32) -> (i32, i32) {
    %c0_i32 = arith.constant 0 : i32
    %c0_i32_0 = arith.constant 0 : i32
    return %arg0, %c0_i32 : i32, i32
  }
}

</mosaic_0001>

<bundles_post_ra>
// kernel: autoencoder_forward.1
= control target key start
LH: loop header
LB: loop body
LE: loop exit
PB: predicated region body
PF: predicated region fallthrough
CT: control target
= control target key end

     0   :  { %10 = vsyncpa [#allocation3], 0  ;;  %s533_s0 = inlined_call_operand.vmem [shape: bf16[16,128], index: 0, kind: input, shape index: {}]   ;;  %s534_s1 = inlined_call_operand.hbm [shape: bf16[128,128], index: 1, kind: input, shape index: {}]   ;;  %s535_s2 = inlined_call_operand.vmem [shape: f32[1,128], index: 2, kind: input, shape index: {}]   ;;  %s536_s3 = inlined_call_operand.hbm [shape: bf16[128,128], index: 3, kind: input, shape index: {}]   ;;  %s537_s4 = inlined_call_operand.vmem [shape: f32[1,128], index: 4, kind: input, shape index: {}]   ;;  %s538_s5 = inlined_call_operand.vmem [shape: f32[16,128], index: 5, kind: output, shape index: {}]  }
   0x1   :  { %11 = vsyncpa [#allocation5], 0  ;;  %s458_s18 = smov [#allocation2]   ;;  %s410_s22 = scalar_lea.hbm %s534_s1, 1024 }
   0x2   :  { %s19_s19 = sshll.u32 %s458_s18, 4  ;;  %p411_p0 = scmp.ne.s32.totalorder %s534_s1, %s410_s22  ;;  %s20_s19 = int_to_ptr.vmem [resolvable:$true] %s19_s19 }
   0x3   :  { %p414_p1 = scmp.lt.u32.totalorder %s410_s22, %s534_s1 }
   0x5   :  { %p416_p2 = pnand %p414_p1, %p411_p0 }
   0x7   :  { %419 = shalt.err (!%p416_p2)
}
   0x8   :  { %s420_s27 = scalar_lea.vmem %s20_s19, 1024  ;;  %p425_p4 = scmp.lt.s32.totalorder %s20_s19, %s20_s19 }
   0x9   :  { %p421_p3 = scmp.ne.s32.totalorder %s20_s19, %s420_s27  ;;  %p426_p5 = scmp.lt.s32.totalorder %s420_s27, %s420_s27 }
   0xb   :  { %p427_p6 = por %p426_p5, %p425_p4 }
   0xd   :  { %p428_p7 = pnand %p427_p6, %p421_p3 }
   0xf   :  { %431 = shalt.err (!%p428_p7)
}
  0x10   :  { %s459_s28 = smov 64   ;;  %s460_s29 = smov 4  }
  0x11   :  { %25 = dma.hbm_to_vmem [thread:$0]  %s534_s1, 1024, %s20_s19, [#allocation3], %s459_s28, %s459_s28, %s460_s29  }
  0x12   :  { %s461_s7 = smov [#allocation4]   ;;  %s432_s11 = scalar_lea.hbm %s536_s3, 1024 }
  0x13   :  { %s33_s8 = sshll.u32 %s461_s7, 4  ;;  %p433_p8 = scmp.ne.s32.totalorder %s536_s3, %s432_s11  ;;  %s34_s8 = int_to_ptr.vmem [resolvable:$true] %s33_s8 }
  0x14   :  { %p436_p9 = scmp.lt.u32.totalorder %s432_s11, %s536_s3 }
  0x16   :  { %p438_p10 = pnand %p436_p9, %p433_p8 }
  0x18   :  { %441 = shalt.err (!%p438_p10)
}
  0x19   :  { %s442_s16 = scalar_lea.vmem %s34_s8, 1024  ;;  %p447_p12 = scmp.lt.s32.totalorder %s34_s8, %s34_s8 }
  0x1a   :  { %p443_p11 = scmp.ne.s32.totalorder %s34_s8, %s442_s16  ;;  %p448_p13 = scmp.lt.s32.totalorder %s442_s16, %s442_s16 }
  0x1c   :  { %p449_p0 = por %p448_p13, %p447_p12 }
  0x1e   :  { %p450_p1 = pnand %p449_p0, %p443_p11 }
  0x20   :  { %453 = shalt.err (!%p450_p1)
}
  0x21   :  { %39 = dma.hbm_to_vmem [thread:$0]  %s536_s3, 1024, %s34_s8, [#allocation5], %s459_s28, %s459_s28, %s460_s29  }
  0x22   :  { %454 = dma.done.wait [#allocation3], 1024  }
  0x23   :  { %455 = vsyncadd [#allocation3], 4294966272 }
  0x24   :  { %456 = dma.done.wait [#allocation5], 1024  }
  0x25   :  { %457 = vsyncadd [#allocation5], 4294966272  ;;  %v462_v0 = vmov 0.0   ;;  %vm463_vm0 = vmmov 0   ;;  %v385_v1 = vld [vmem:[#allocation2] sm:$0xff]   ;;  %v386_v2 = vld [vmem:[#allocation2 + $0x8] sm:$0xff]  }
  0x26   :  { %339 = vmatprep.subr.bf16.mxu0 %v462_v0  ;;  %355 = vmatprep.mubr.msk.bf16.mxu0 %vm463_vm0, %v462_v0  ;;  %v387_v3 = vld [vmem:[#allocation2 + $0x10] sm:$0xff]   ;;  %v394_v4 = vld [vmem:[#allocation4] sm:$0xff]   ;;  %v388_v5 = vld [vmem:[#allocation2 + $0x18] sm:$0xff]  }
  0x27   :  { %359 = vmatprep.subr.bf16.mxu1 %v462_v0  ;;  %375 = vmatprep.mubr.msk.bf16.mxu1 %vm463_vm0, %v462_v0  ;;  %v395_v6 = vld [vmem:[#allocation4 + $0x8] sm:$0xff]   ;;  %v389_v7 = vld [vmem:[#allocation2 + $0x20] sm:$0xff]   ;;  %v396_v8 = vld [vmem:[#allocation4 + $0x10] sm:$0xff]  }
  0x28   :  { %340 = vmatpush3.bf16.msra.mxu0 %v385_v1  ;;  %360 = vmatpush3.bf16.msra.mxu1 %v394_v4  ;;  %v390_v9 = vld [vmem:[#allocation2 + $0x28] sm:$0xff]   ;;  %v397_v10 = vld [vmem:[#allocation4 + $0x18] sm:$0xff]   ;;  %v391_v11 = vld [vmem:[#allocation2 + $0x30] sm:$0xff]  }
  0x29   :  { %341 = vmatprep.subr.bf16.mxu0 %v462_v0  ;;  %361 = vmatprep.subr.bf16.mxu1 %v462_v0  ;;  %v398_v12 = vld [vmem:[#allocation4 + $0x20] sm:$0xff]   ;;  %v392_v13 = vld [vmem:[#allocation2 + $0x38] sm:$0xff]   ;;  %v399_v14 = vld [vmem:[#allocation4 + $0x28] sm:$0xff]  }
  0x2a   :  { %v393_v15 = vld [vmem:[%s533_s0] sm:$0xff]   ;;  %v400_v16 = vld [vmem:[#allocation4 + $0x30] sm:$0xff]   ;;  %v401_v17 = vld [vmem:[#allocation4 + $0x38] sm:$0xff]  }
  0x2b   :  { %v302_v18 = vld [vmem:[%s535_s2] ss:$0 sm:$0xff] }
  0x2c   :  { %342 = vmatpush3.bf16.msra.mxu0 %v386_v2  ;;  %362 = vmatpush3.bf16.msra.mxu1 %v395_v6  ;;  %v312_v28 = vld [vmem:[%s537_s4] ss:$0 sm:$0xff] }
  0x2d   :  { %343 = vmatprep.subr.bf16.mxu0 %v462_v0  ;;  %363 = vmatprep.subr.bf16.mxu1 %v462_v0 }
  0x30   :  { %344 = vmatpush3.bf16.msra.mxu0 %v387_v3  ;;  %364 = vmatpush3.bf16.msra.mxu1 %v396_v8 }
  0x31   :  { %345 = vmatprep.subr.bf16.mxu0 %v462_v0  ;;  %365 = vmatprep.subr.bf16.mxu1 %v462_v0 }
  0x34   :  { %346 = vmatpush3.bf16.msra.mxu0 %v388_v5  ;;  %366 = vmatpush3.bf16.msra.mxu1 %v397_v10 }
  0x35   :  { %347 = vmatprep.subr.bf16.mxu0 %v462_v0  ;;  %367 = vmatprep.subr.bf16.mxu1 %v462_v0 }
  0x38   :  { %348 = vmatpush3.bf16.msra.mxu0 %v389_v7  ;;  %368 = vmatpush3.bf16.msra.mxu1 %v398_v12 }
  0x39   :  { %349 = vmatprep.subr.bf16.mxu0 %v462_v0  ;;  %369 = vmatprep.subr.bf16.mxu1 %v462_v0 }
  0x3c   :  { %350 = vmatpush3.bf16.msra.mxu0 %v390_v9  ;;  %370 = vmatpush3.bf16.msra.mxu1 %v399_v14 }
  0x3d   :  { %351 = vmatprep.subr.bf16.mxu0 %v462_v0  ;;  %371 = vmatprep.subr.bf16.mxu1 %v462_v0 }
  0x40   :  { %352 = vmatpush3.bf16.msra.mxu0 %v391_v11  ;;  %372 = vmatpush3.bf16.msra.mxu1 %v400_v16 }
  0x41   :  { %353 = vmatprep.subr.bf16.mxu0 %v462_v0  ;;  %373 = vmatprep.subr.bf16.mxu1 %v462_v0 }
  0x44   :  { %354 = vmatpush3.bf16.msra.mxu0 %v392_v13  ;;  %374 = vmatpush3.bf16.msra.mxu1 %v401_v17 }
  0x47   :  { %356 = vmatmul.mubr.bf16.vlgmr.msra.gmra.mrb[0].mxu0 %v393_v15 }
 0x11a   :  { %v162_v19 = vpop.f32.mrb[0].mxu0 }
 0x11b   :  { %v163_v20 = vadd.f32 %v302_v18, %v162_v19  ;;  %v357_v21 = vpop.f32.mrb[1].mxu0 }
 0x11c   :  { %v165_v22 = vpop.f32.mrb[2].mxu0 }
 0x11d   :  { %v166_v23 = vadd.f32 %v302_v18, %v165_v22  ;;  %v358_v24 = vpop.f32.mrb[3].mxu0  ;;  %v169_v25 = vmax.f32 %v163_v20, 0.0 }
 0x11f   :  { %v170_v26 = vmax.f32 %v166_v23, 0.0 }
 0x121   :  { %v171_v27 = vpack.c.bf16 %v170_v26, %v169_v25 }
 0x123   :  { %376 = vmatmul.mubr.bf16.vlgmr.msra.gmra.mrb[0].mxu1 %v171_v27 }
 0x1f6   :  { %v277_v29 = vpop.f32.mrb[0].mxu1 }
 0x1f7   :  { %v278_v30 = vadd.f32 %v312_v28, %v277_v29  ;;  %v377_v31 = vpop.f32.mrb[1].mxu1 }
 0x1f8   :  { %v280_v32 = vpop.f32.mrb[2].mxu1 }
 0x1f9   :  { %v284_v33 = vsub.f32 0.0, %v278_v30  ;;  %v281_v34 = vadd.f32 %v312_v28, %v280_v32  ;;  %v378_v35 = vpop.f32.mrb[3].mxu1 }
 0x1fb   :  { %v286_v36 = vmul.f32 1.442695, %v284_v33  ;;  %v285_v37 = vsub.f32 0.0, %v281_v34 }
 0x1fd   :  { %402 = vpow2.f32 %v286_v36  ;;  %v288_v38 = vmul.f32 1.442695, %v285_v37 }
 0x1ff   :  { %404 = vpow2.f32 %v288_v38 }
 0x207   :  { %v403_v39 = vpop.eup %402 }
 0x208   :  { %v290_v40 = vadd.f32 1.0, %v403_v39 }
 0x209   :  { %v405_v41 = vpop.eup %404 }
 0x20a   :  { %406 = vrcp.f32 %v290_v40  ;;  %v291_v42 = vadd.f32 1.0, %v405_v41 }
 0x20c   :  { %408 = vrcp.f32 %v291_v42 }
 0x214   :  { %v407_v43 = vpop.eup %406 }
 0x215   :  { %294 = vst [vmem:[%s538_s5] sm:$0xff] %v407_v43 }
 0x216   :  { %v409_v44 = vpop.eup %408 }
 0x217   :  { %295 = vst [vmem:[%s538_s5 + $0x8] sm:$0xff] %v409_v44 }
 0x218   :  { %300 = vsyncpa [#allocation3], 1 }
 0x219   :  { %301 = vsyncpa [#allocation5], 1 }

</bundles_post_ra>
